<compile_context>
chip_gen: v7x
topology: tpu7x:2x2x1
jax: 0.10.0
libtpu: 0.0.40
codegen_flags: <defaults>
</compile_context>

<pallas_src>
import jax
import jax.numpy as jnp
from jax.experimental import pallas as pl
from jax.experimental.pallas import tpu as pltpu

# TODO(synk): dropout is stateless-identity here (inference); training-mode
# dropout would need pltpu.prng_seed / prng_random_bits masking.


def _ffn_kernel(x_ref, w1_ref, b1_ref, w2_ref, b2_ref, g_ref, beta_ref, o_ref):
    # x_ref: (TM, d_in) row tile; other operands are full-array constant blocks.
    x = x_ref[...]                               # keep native dtype for the MXU

    # w_1: Linear(d_in -> d_hid) + ReLU, f32 accumulation on the MXU.
    h = jnp.dot(x, w1_ref[...], preferred_element_type=jnp.float32)
    h = jnp.maximum(h + b1_ref[...], 0.0)        # b1 already f32

    # w_2: Linear(d_hid -> d_in); cast hidden activations back to the weight
    # dtype so the second matmul also runs on the native MXU path.
    y = jnp.dot(h.astype(w2_ref.dtype), w2_ref[...],
                preferred_element_type=jnp.float32)
    y = y + b2_ref[...] + x.astype(jnp.float32)  # bias + residual (f32)

    # LayerNorm over the last dim (entirely inside the row tile), eps = 1e-6.
    mean = jnp.mean(y, axis=-1, keepdims=True)
    yc = y - mean
    var = jnp.mean(yc * yc, axis=-1, keepdims=True)
    y = yc * jax.lax.rsqrt(var + 1e-6)
    y = y * g_ref[...] + beta_ref[...]           # gamma/beta already f32

    o_ref[...] = y.astype(o_ref.dtype)


def positionwise_feed_forward(x, w1, b1, w2, b2, gamma, beta, *, tm=256):
    """x: (batch, seq, d_in).  w1: (d_in, d_hid), w2: (d_hid, d_in) (pre-transposed)."""
    batch, seq, d_in = x.shape
    d_hid = w1.shape[1]
    n = batch * seq

    # Row tile: large to feed the MXU and amortize per-grid-step overhead, but
    # never larger than the row count; keep >=4 grid steps when rows allow it
    # (so both v7x TensorCores get work); keep a multiple of 8 sublanes; shrink
    # if one tile's f32 intermediates would blow past ~24 MiB of VMEM.
    tm = max(8, min(int(tm), n))
    if n >= 4 * 128:
        tm = min(tm, max(128, n // 4))
    tm -= tm % 8
    while tm > 8 and tm * (d_hid + 3 * d_in) * 4 > (24 << 20):
        tm = max(8, (tm // 2) - ((tm // 2) % 8))
    n_pad = pl.cdiv(n, tm) * tm

    x2d = x.reshape(n, d_in)
    if n_pad != n:
        x2d = jnp.pad(x2d, ((0, n_pad - n), (0, 0)))

    # Constants pre-cast to f32 once (one-time XLA cast instead of per-tile VPU work).
    b1r = b1.reshape(1, d_hid).astype(jnp.float32)
    b2r = b2.reshape(1, d_in).astype(jnp.float32)
    gr = gamma.reshape(1, d_in).astype(jnp.float32)
    br = beta.reshape(1, d_in).astype(jnp.float32)

    # Explicit VMEM budget: 1x resident weights (single-buffered), 2x in/out
    # row tiles (double-buffered), f32 intermediates, + ~50% headroom.
    x_bytes = jnp.dtype(x.dtype).itemsize
    w_bytes = jnp.dtype(w1.dtype).itemsize
    weight_bytes = 2 * d_in * d_hid * w_bytes
    tile_bytes = 4 * tm * d_in * x_bytes                 # in + out, double-buffered
    f32_tmp_bytes = tm * (d_hid + 2 * d_in) * 4          # h and y intermediates
    misc_bytes = (2 * d_hid + 8 * d_in) * 4
    vmem_limit = int(1.5 * (weight_bytes + tile_bytes + f32_tmp_bytes + misc_bytes))
    vmem_limit = max(8 << 20, min(vmem_limit, 64 << 20))  # 64 MiB = v7x physical VMEM

    def const_spec(shape):
        # Constant operands: index_map never changes -> single-buffer them.
        return pl.BlockSpec(shape, lambda i: (0, 0), pipeline_mode=pl.Buffered(1))

    out2d = pl.pallas_call(
        _ffn_kernel,
        out_shape=jax.ShapeDtypeStruct((n_pad, d_in), x.dtype),
        grid_spec=pltpu.PrefetchScalarGridSpec(
            num_scalar_prefetch=0,
            grid=(n_pad // tm,),
            in_specs=[
                pl.BlockSpec((tm, d_in), lambda i: (i, 0)),   # x row tile
                const_spec((d_in, d_hid)),                    # W1
                const_spec((1, d_hid)),                       # b1 (f32)
                const_spec((d_hid, d_in)),                    # W2
                const_spec((1, d_in)),                        # b2 (f32)
                const_spec((1, d_in)),                        # gamma (f32)
                const_spec((1, d_in)),                        # beta (f32)
            ],
            out_specs=pl.BlockSpec((tm, d_in), lambda i: (i, 0)),
        ),
        compiler_params=pltpu.CompilerParams(
            dimension_semantics=("parallel",),
            vmem_limit_bytes=vmem_limit,
        ),
    )(x2d, w1, b1r, w2, b2r, gr, br)

    if n_pad != n:
        out2d = out2d[:n]
    return out2d.reshape(batch, seq, d_in)


if __name__ == "__main__":
    # Small, deterministic example consistent with the module's forward.
    # d_in / d_hid are kept multiples of 128 for lane-dense stores & full MXU
    # tiles while staying small: (batch=2, seq=8, d_in=128), d_hid=256.
    batch, seq, d_in, d_hid = 2, 8, 128, 256
    key = jax.random.PRNGKey(0)
    kx, k1, kb1, k2, kb2 = jax.random.split(key, 5)

    x = jax.random.normal(kx, (batch, seq, d_in), dtype=jnp.float32)

    # nn.Linear(d_in, d_hid): weight (d_hid, d_in), bias (d_hid,).
    # Weights are stored pre-transposed for the kernel: w1 = weight.T
    w1 = jax.random.normal(k1, (d_in, d_hid), dtype=jnp.float32) * 0.05
    b1 = jax.random.normal(kb1, (d_hid,), dtype=jnp.float32) * 0.05
    w2 = jax.random.normal(k2, (d_hid, d_in), dtype=jnp.float32) * 0.05
    b2 = jax.random.normal(kb2, (d_in,), dtype=jnp.float32) * 0.05
    gamma = jnp.ones((d_in,), dtype=jnp.float32)   # LayerNorm default weight
    beta = jnp.zeros((d_in,), dtype=jnp.float32)   # LayerNorm default bias

    out = positionwise_feed_forward(x, w1, b1, w2, b2, gamma, beta)
    out = jax.block_until_ready(out)

    # Pure-JAX reference for correctness.
    h_ref = jnp.maximum(x @ w1 + b1, 0.0)
    y_ref = h_ref @ w2 + b2 + x
    mu = jnp.mean(y_ref, axis=-1, keepdims=True)
    va = jnp.mean((y_ref - mu) ** 2, axis=-1, keepdims=True)
    ref = (y_ref - mu) / jnp.sqrt(va + 1e-6) * gamma + beta

    assert out.shape == (batch, seq, d_in)
    assert jnp.allclose(out, ref, atol=2e-4, rtol=2e-4), (
        float(jnp.max(jnp.abs(out - ref))))
    print("KERNEL_OK")
</pallas_src>

<mosaic_0001>
module attributes {stable_mosaic.version = 11 : i64} {
  func.func @_ffn_kernel(%arg0: i32, %arg1: memref<16x128xf32, #tpu.memory_space<vmem>>, %arg2: memref<128x256xf32, #tpu.memory_space<vmem>>, %arg3: memref<1x256xf32, #tpu.memory_space<vmem>>, %arg4: memref<256x128xf32, #tpu.memory_space<vmem>>, %arg5: memref<1x128xf32, #tpu.memory_space<vmem>>, %arg6: memref<1x128xf32, #tpu.memory_space<vmem>>, %arg7: memref<1x128xf32, #tpu.memory_space<vmem>>, %arg8: memref<16x128xf32, #tpu.memory_space<vmem>>) attributes {dimension_semantics = [#tpu.dimension_semantics<parallel>], iteration_bounds = array<i64: 1>, scalar_prefetch = 0 : i64, scratch_operands = 0 : i64, tpu.core_type = #tpu.core_type<tc>, window_params = [{transform_indices = @transform_0, window_bounds = array<i64: 16, 128>}, {pipeline_mode = #tpu.pipeline_mode<synchronous>, transform_indices = @transform_1, window_bounds = array<i64: 128, 256>}, {pipeline_mode = #tpu.pipeline_mode<synchronous>, transform_indices = @transform_2, window_bounds = array<i64: 1, 256>}, {pipeline_mode = #tpu.pipeline_mode<synchronous>, transform_indices = @transform_3, window_bounds = array<i64: 256, 128>}, {pipeline_mode = #tpu.pipeline_mode<synchronous>, transform_indices = @transform_4, window_bounds = array<i64: 1, 128>}, {pipeline_mode = #tpu.pipeline_mode<synchronous>, transform_indices = @transform_5, window_bounds = array<i64: 1, 128>}, {pipeline_mode = #tpu.pipeline_mode<synchronous>, transform_indices = @transform_6, window_bounds = array<i64: 1, 128>}, {transform_indices = @transform_7, window_bounds = array<i64: 16, 128>}]} {
    %c0 = arith.constant 0 : index
    %c0_0 = arith.constant 0 : index
    %0 = vector.load %arg1[%c0, %c0_0] : memref<16x128xf32, #tpu.memory_space<vmem>>, vector<16x128xf32>
    %c0_1 = arith.constant 0 : index
    %c0_2 = arith.constant 0 : index
    %1 = vector.load %arg2[%c0_1, %c0_2] : memref<128x256xf32, #tpu.memory_space<vmem>>, vector<128x256xf32>
    %cst = arith.constant dense<0.000000e+00> : vector<16x256xf32>
    %2 = tpu.matmul %0, %1, %cst {dimension_numbers = #tpu.dot_dimension_numbers<[1], [0], [0], [1], [0, 0, 1, 1], [], []>} : vector<16x128xf32>, vector<128x256xf32>, vector<16x256xf32> -> vector<16x256xf32>
    %c0_3 = arith.constant 0 : index
    %c0_4 = arith.constant 0 : index
    %3 = vector.load %arg3[%c0_3, %c0_4] : memref<1x256xf32, #tpu.memory_space<vmem>>, vector<1x256xf32>
    %4 = vector.broadcast %3 : vector<1x256xf32> to vector<16x256xf32>
    %5 = arith.addf %2, %4 : vector<16x256xf32>
    %cst_5 = arith.constant 0.000000e+00 : f32
    %6 = vector.broadcast %cst_5 : f32 to vector<16x256xf32>
    %7 = arith.maximumf %5, %6 : vector<16x256xf32>
    %c0_6 = arith.constant 0 : index
    %c0_7 = arith.constant 0 : index
    %8 = vector.load %arg4[%c0_6, %c0_7] : memref<256x128xf32, #tpu.memory_space<vmem>>, vector<256x128xf32>
    %cst_8 = arith.constant dense<0.000000e+00> : vector<16x128xf32>
    %9 = tpu.matmul %7, %8, %cst_8 {dimension_numbers = #tpu.dot_dimension_numbers<[1], [0], [0], [1], [0, 0, 1, 1], [], []>} : vector<16x256xf32>, vector<256x128xf32>, vector<16x128xf32> -> vector<16x128xf32>
    %c0_9 = arith.constant 0 : index
    %c0_10 = arith.constant 0 : index
    %10 = vector.load %arg5[%c0_9, %c0_10] : memref<1x128xf32, #tpu.memory_space<vmem>>, vector<1x128xf32>
    %11 = vector.broadcast %10 : vector<1x128xf32> to vector<16x128xf32>
    %12 = arith.addf %9, %11 : vector<16x128xf32>
    %13 = arith.addf %12, %0 : vector<16x128xf32>
    %cst_11 = arith.constant dense<0.000000e+00> : vector<16xf32>
    %14 = vector.multi_reduction <add>, %13, %cst_11 [1] : vector<16x128xf32> to vector<16xf32>
    %15 = vector.shape_cast %14 : vector<16xf32> to vector<16x1xf32>
    %cst_12 = arith.constant 1.280000e+02 : f32
    %16 = vector.broadcast %cst_12 : f32 to vector<16x1xf32>
    %17 = arith.divf %15, %16 : vector<16x1xf32>
    %18 = vector.broadcast %17 : vector<16x1xf32> to vector<16x128xf32>
    %19 = arith.subf %13, %18 : vector<16x128xf32>
    %20 = arith.mulf %19, %19 : vector<16x128xf32>
    %cst_13 = arith.constant dense<0.000000e+00> : vector<16xf32>
    %21 = vector.multi_reduction <add>, %20, %cst_13 [1] : vector<16x128xf32> to vector<16xf32>
    %22 = vector.shape_cast %21 : vector<16xf32> to vector<16x1xf32>
    %cst_14 = arith.constant 1.280000e+02 : f32
    %23 = vector.broadcast %cst_14 : f32 to vector<16x1xf32>
    %24 = arith.divf %22, %23 : vector<16x1xf32>
    %cst_15 = arith.constant 9.99999997E-7 : f32
    %25 = vector.broadcast %cst_15 : f32 to vector<16x1xf32>
    %26 = arith.addf %24, %25 : vector<16x1xf32>
    %27 = math.rsqrt %26 : vector<16x1xf32>
    %28 = vector.broadcast %27 : vector<16x1xf32> to vector<16x128xf32>
    %29 = arith.mulf %19, %28 : vector<16x128xf32>
    %c0_16 = arith.constant 0 : index
    %c0_17 = arith.constant 0 : index
    %30 = vector.load %arg6[%c0_16, %c0_17] : memref<1x128xf32, #tpu.memory_space<vmem>>, vector<1x128xf32>
    %31 = vector.broadcast %30 : vector<1x128xf32> to vector<16x128xf32>
    %32 = arith.mulf %29, %31 : vector<16x128xf32>
    %c0_18 = arith.constant 0 : index
    %c0_19 = arith.constant 0 : index
    %33 = vector.load %arg7[%c0_18, %c0_19] : memref<1x128xf32, #tpu.memory_space<vmem>>, vector<1x128xf32>
    %34 = vector.broadcast %33 : vector<1x128xf32> to vector<16x128xf32>
    %35 = arith.addf %32, %34 : vector<16x128xf32>
    %c0_20 = arith.constant 0 : index
    %c0_21 = arith.constant 0 : index
    %36 = vector.load %arg8[%c0_20, %c0_21] : memref<16x128xf32, #tpu.memory_space<vmem>>, vector<16x128xf32>
    tpu.vector_store %arg8[%c0_20, %c0_21], %35 {strides = array<i32>} : memref<16x128xf32, #tpu.memory_space<vmem>>, vector<16x128xf32>,
    return
  }
  func.func @transform_0(%arg0: i32) -> (i32, i32) {
    %c0_i32 = arith.constant 0 : i32
    %c0_i32_0 = arith.constant 0 : i32
    return %arg0, %c0_i32 : i32, i32
  }
  func.func @transform_1(%arg0: i32) -> (i32, i32) {
    %c0_i32 = arith.constant 0 : i32
    %c0_i32_0 = arith.constant 0 : i32
    %c0_i32_1 = arith.constant 0 : i32
    return %c0_i32, %c0_i32_0 : i32, i32
  }
  func.func @transform_2(%arg0: i32) -> (i32, i32) {
    %c0_i32 = arith.constant 0 : i32
    %c0_i32_0 = arith.constant 0 : i32
    %c0_i32_1 = arith.constant 0 : i32
    return %c0_i32, %c0_i32_0 : i32, i32
  }
  func.func @transform_3(%arg0: i32) -> (i32, i32) {
    %c0_i32 = arith.constant 0 : i32
    %c0_i32_0 = arith.constant 0 : i32
    %c0_i32_1 = arith.constant 0 : i32
    return %c0_i32, %c0_i32_0 : i32, i32
  }
  func.func @transform_4(%arg0: i32) -> (i32, i32) {
    %c0_i32 = arith.constant 0 : i32
    %c0_i32_0 = arith.constant 0 : i32
    %c0_i32_1 = arith.constant 0 : i32
    return %c0_i32, %c0_i32_0 : i32, i32
  }
  func.func @transform_5(%arg0: i32) -> (i32, i32) {
    %c0_i32 = arith.constant 0 : i32
    %c0_i32_0 = arith.constant 0 : i32
    %c0_i32_1 = arith.constant 0 : i32
    return %c0_i32, %c0_i32_0 : i32, i32
  }
  func.func @transform_6(%arg0: i32) -> (i32, i32) {
    %c0_i32 = arith.constant 0 : i32
    %c0_i32_0 = arith.constant 0 : i32
    %c0_i32_1 = arith.constant 0 : i32
    return %c0_i32, %c0_i32_0 : i32, i32
  }
  func.func @transform_7(%arg0: i32) -> (i32, i32) {
    %c0_i32 = arith.constant 0 : i32
    %c0_i32_0 = arith.constant 0 : i32
    return %arg0, %c0_i32 : i32, i32
  }
}

</mosaic_0001>

<bundles_post_ra>
// kernel: tpu_custom_call.1
= control target key start
LH: loop header
LB: loop body
LE: loop exit
PB: predicated region body
PF: predicated region fallthrough
CT: control target
= control target key end

     0   :  { %12 = vsyncpa [#allocation3], 0  ;;  %s704_s0 = inlined_call_operand.hbm [shape: f32[16,128], index: 0, kind: input, shape index: {}]   ;;  %s705_s1 = inlined_call_operand.hbm [shape: f32[128,256], index: 1, kind: input, shape index: {}]   ;;  %s706_s2 = inlined_call_operand.vmem [shape: f32[1,256], index: 2, kind: input, shape index: {}]   ;;  %s707_s3 = inlined_call_operand.hbm [shape: f32[256,128], index: 3, kind: input, shape index: {}]   ;;  %s708_s4 = inlined_call_operand.vmem [shape: f32[1,128], index: 4, kind: input, shape index: {}]   ;;  %s709_s5 = inlined_call_operand.vmem [shape: f32[1,128], index: 5, kind: input, shape index: {}]   ;;  %s710_s6 = inlined_call_operand.vmem [shape: f32[1,128], index: 6, kind: input, shape index: {}]   ;;  %s711_s7 = inlined_call_operand.hbm [shape: f32[16,128], index: 7, kind: output, shape index: {}]  }
   0x1   :  { %13 = vsyncpa [#allocation6], 0 }
   0x2   :  { %14 = vsyncpa [#allocation4], 0  ;;  %s584_s24 = smov [#allocation5]   ;;  %s490_s28 = scalar_lea.hbm %s705_s1, 4096 }
   0x3   :  { %s32_s25 = sshll.u32 %s584_s24, 4  ;;  %p491_p0 = scmp.ne.s32.totalorder %s705_s1, %s490_s28  ;;  %s33_s25 = int_to_ptr.vmem [resolvable:$true] %s32_s25 }
   0x4   :  { %p494_p1 = scmp.lt.u32.totalorder %s490_s28, %s705_s1 }
   0x6   :  { %p496_p2 = pnand %p494_p1, %p491_p0 }
   0x8   :  { %499 = shalt.err (!%p496_p2)
}
   0x9   :  { %s500_s10 = scalar_lea.vmem %s33_s25, 4096  ;;  %p505_p4 = scmp.lt.s32.totalorder %s33_s25, %s33_s25 }
   0xa   :  { %p501_p3 = scmp.ne.s32.totalorder %s33_s25, %s500_s10  ;;  %p506_p5 = scmp.lt.s32.totalorder %s500_s10, %s500_s10 }
   0xc   :  { %p507_p6 = por %p506_p5, %p505_p4 }
   0xe   :  { %p508_p7 = pnand %p507_p6, %p501_p3 }
  0x10   :  { %511 = shalt.err (!%p508_p7)
}
  0x11   :  { %s585_s11 = smov 256   ;;  %s586_s12 = smov 16  }
  0x12   :  { %38 = dma.hbm_to_vmem [thread:$0]  %s705_s1, 4096, %s33_s25, [#allocation6], %s585_s11, %s585_s11, %s586_s12  }
  0x13   :  { %s587_s15 = smov [#allocation2]   ;;  %s512_s19 = scalar_lea.hbm %s704_s0, 256 }
  0x14   :  { %s20_s16 = sshll.u32 %s587_s15, 4  ;;  %p513_p8 = scmp.ne.s32.totalorder %s704_s0, %s512_s19  ;;  %s21_s16 = int_to_ptr.vmem [resolvable:$true] %s20_s16 }
  0x15   :  { %p516_p9 = scmp.lt.u32.totalorder %s512_s19, %s704_s0 }
  0x17   :  { %p518_p10 = pnand %p516_p9, %p513_p8 }
  0x19   :  { %521 = shalt.err (!%p518_p10)
}
  0x1a   :  { %s522_s24 = scalar_lea.vmem %s21_s16, 256  ;;  %p527_p12 = scmp.lt.s32.totalorder %s21_s16, %s21_s16 }
  0x1b   :  { %p523_p11 = scmp.ne.s32.totalorder %s21_s16, %s522_s24  ;;  %p528_p13 = scmp.lt.s32.totalorder %s522_s24, %s522_s24 }
  0x1d   :  { %p529_p0 = por %p528_p13, %p527_p12 }
  0x1f   :  { %p530_p1 = pnand %p529_p0, %p523_p11 }
  0x21   :  { %533 = shalt.err (!%p530_p1)
}
  0x22   :  { %s588_s1 = smov 128   ;;  %s589_s25 = smov 8  }
  0x23   :  { %26 = dma.hbm_to_vmem [thread:$0]  %s704_s0, 256, %s21_s16, [#allocation3], %s588_s1, %s588_s1, %s589_s25  }
  0x24   :  { %s590_s28 = smov [#allocation7]   ;;  %s534_s9 = scalar_lea.hbm %s707_s3, 4096 }
  0x25   :  { %s46_s29 = sshll.u32 %s590_s28, 4  ;;  %p535_p2 = scmp.ne.s32.totalorder %s707_s3, %s534_s9  ;;  %s47_s29 = int_to_ptr.vmem [resolvable:$true] %s46_s29 }
  0x26   :  { %p538_p3 = scmp.lt.u32.totalorder %s534_s9, %s707_s3 }
  0x28   :  { %p540_p4 = pnand %p538_p3, %p535_p2 }
  0x2a   :  { %543 = shalt.err (!%p540_p4)
}
  0x2b   :  { %s544_s14 = scalar_lea.vmem %s47_s29, 4096  ;;  %p549_p6 = scmp.lt.s32.totalorder %s47_s29, %s47_s29 }
  0x2c   :  { %p545_p5 = scmp.ne.s32.totalorder %s47_s29, %s544_s14  ;;  %p550_p7 = scmp.lt.s32.totalorder %s544_s14, %s544_s14 }
  0x2e   :  { %p551_p8 = por %p550_p7, %p549_p6 }
  0x30   :  { %p552_p9 = pnand %p551_p8, %p545_p5 }
  0x32   :  { %555 = shalt.err (!%p552_p9)
}
  0x33   :  { %52 = dma.hbm_to_vmem [thread:$0]  %s707_s3, 4096, %s47_s29, [#allocation6], %s588_s1, %s588_s1, %s589_s25  }
  0x34   :  { %578 = dma.done.wait [#allocation3], 256  }
  0x35   :  { %579 = vsyncadd [#allocation3], 4294967040 }
  0x36   :  { %580 = dma.done.wait [#allocation6], 8192  }
  0x37   :  { %581 = vsyncadd [#allocation6], 4294959104  ;;  %v591_v0 = vmov 0.0   ;;  %v71_v1 = vld [vmem:[#allocation5 + $0x8] sm:$0xff]  ;;  %v73_v2 = vld [vmem:[#allocation5 + $0x18] sm:$0xff]  ;;  %s592_s21 = smov [#allocation8]  }
  0x38   :  { %178 = vmatprep.mubr.f32.mxu0 %v591_v0  ;;  %v70_v3 = vld [vmem:[#allocation5] sm:$0xff]  ;;  %v413_v4 = vpack.c.bf16 %v73_v2, %v71_v1  ;;  %v72_v5 = vld [vmem:[#allocation5 + $0x10] sm:$0xff]  ;;  %v75_v6 = vld [vmem:[#allocation5 + $0x28] sm:$0xff]  ;;  %s359_s22 = sshll.u32 %s592_s21, 4  ;;  %s360_s22 = int_to_ptr.vmem [resolvable:$true] %s359_s22 }
  0x39   :  { %v77_v7 = vld [vmem:[#allocation5 + $0x38] sm:$0xff]  ;;  %v415_v8 = vpack.c.bf16 %v72_v5, %v70_v3  ;;  %v74_v10 = vld [vmem:[#allocation5 + $0x20] sm:$0xff]  ;;  %v76_v11 = vld [vmem:[#allocation5 + $0x30] sm:$0xff]  ;;  %s556_s23 = scalar_lea.vmem %s360_s22, 256  ;;  %p561_p11 = scmp.lt.s32.totalorder %s360_s22, %s360_s22 }
  0x3a   :  { %v417_v9 = vpack.c.bf16 %v77_v7, %v75_v6  ;;  %v79_v12 = vld [vmem:[#allocation5 + $0x48] sm:$0xff]  ;;  %414 = vmatprep.subr.bf16.mxu0 %v413_v4  ;;  %v81_v13 = vld [vmem:[#allocation5 + $0x58] sm:$0xff]  ;;  %v419_v14 = vpack.c.bf16 %v76_v11, %v74_v10  ;;  %v78_v16 = vld [vmem:[#allocation5 + $0x40] sm:$0xff]  ;;  %p557_p10 = scmp.ne.s32.totalorder %s360_s22, %s556_s23  ;;  %p562_p12 = scmp.lt.s32.totalorder %s556_s23, %s556_s23 }
  0x3b   :  { %416 = vmatpush1.bf16.msra.mxu0 %v415_v8  ;;  %v421_v15 = vpack.c.bf16 %v81_v13, %v79_v12  ;;  %v80_v17 = vld [vmem:[#allocation5 + $0x50] sm:$0xff]  ;;  %v83_v18 = vld [vmem:[#allocation5 + $0x68] sm:$0xff]  ;;  %v85_v19 = vld [vmem:[#allocation5 + $0x78] sm:$0xff] }
  0x3c   :  { %418 = vmatprep.subr.bf16.mxu0 %v417_v9  ;;  %v423_v20 = vpack.c.bf16 %v80_v17, %v78_v16  ;;  %v425_v21 = vpack.c.bf16 %v85_v19, %v83_v18  ;;  %v82_v22 = vld [vmem:[#allocation5 + $0x60] sm:$0xff]  ;;  %v84_v23 = vld [vmem:[#allocation5 + $0x70] sm:$0xff]  ;;  %v87_v24 = vld [vmem:[#allocation5 + $0x88] sm:$0xff]  ;;  %p563_p13 = por %p562_p12, %p561_p11 }
  0x3d   :  { %v89_v25 = vld [vmem:[#allocation5 + $0x98] sm:$0xff]  ;;  %v86_v26 = vld [vmem:[#allocation5 + $0x80] sm:$0xff]  ;;  %v88_v27 = vld [vmem:[#allocation5 + $0x90] sm:$0xff]  ;;  %v427_v30 = vpack.c.bf16 %v84_v23, %v82_v22 }
  0x3e   :  { %v211_v28 = vld [vmem:[#allocation7 + $0x80] sm:$0xff]  ;;  %v212_v29 = vld [vmem:[#allocation7 + $0x88] sm:$0xff]  ;;  %v213_v35 = vld [vmem:[#allocation7 + $0x90] sm:$0xff]  ;;  %v429_v36 = vpack.c.bf16 %v89_v25, %v87_v24  ;;  %v431_v46 = vpack.c.bf16 %v88_v27, %v86_v26  ;;  %p564_p0 = pnand %p563_p13, %p557_p10 }
  0x3f   :  { %420 = vmatpush1.bf16.msra.mxu0 %v419_v14  ;;  %v91_v31 = vld [vmem:[#allocation5 + $0xa8] sm:$0xff]  ;;  %v445_v32 = vpack.c.bf16 %v212_v29, %v211_v28  ;;  %v195_v33 = vld [vmem:[#allocation7] sm:$0xff]  ;;  %v214_v38 = vld [vmem:[#allocation7 + $0x98] sm:$0xff] }
  0x40   :  { %422 = vmatprep.subr.bf16.mxu0 %v421_v15  ;;  %v196_v34 = vld [vmem:[#allocation7 + $0x8] sm:$0xff]  ;;  %v197_v39 = vld [vmem:[#allocation7 + $0x10] sm:$0xff]  ;;  %v198_v40 = vld [vmem:[#allocation7 + $0x18] sm:$0xff]  ;;  %v449_v42 = vpack.c.bf16 %v214_v38, %v213_v35 }
  0x41   :  { %v447_v37 = vpack.c.bf16 %v196_v34, %v195_v33  ;;  %v93_v41 = vld [vmem:[#allocation5 + $0xb8] sm:$0xff]  ;;  %446 = vmatprep.subr.bf16.mxu1 %v445_v32  ;;  %v215_v43 = vld [vmem:[#allocation7 + $0xa0] sm:$0xff]  ;;  %v216_v44 = vld [vmem:[#allocation7 + $0xa8] sm:$0xff]  ;;  %v451_v45 = vpack.c.bf16 %v198_v40, %v197_v39 }
  0x42   :  { %v90_v47 = vld [vmem:[#allocation5 + $0xa0] sm:$0xff]  ;;  %v453_v48 = vpack.c.bf16 %v216_v44, %v215_v43  ;;  %v200_v50 = vld [vmem:[#allocation7 + $0x28] sm:$0xff]  ;;  %v433_v51 = vpack.c.bf16 %v93_v41, %v91_v31  ;;  %v92_v52 = vld [vmem:[#allocation5 + $0xb0] sm:$0xff] }
  0x43   :  { %424 = vmatpush1.bf16.msra.mxu0 %v423_v20  ;;  %448 = vmatpush3.bf16.msra.mxu1 %v447_v37  ;;  %v199_v49 = vld [vmem:[#allocation7 + $0x20] sm:$0xff]  ;;  %v217_v53 = vld [vmem:[#allocation7 + $0xb0] sm:$0xff]  ;;  %v218_v54 = vld [vmem:[#allocation7 + $0xb8] sm:$0xff]  ;;  %v435_v58 = vpack.c.bf16 %v92_v52, %v90_v47 }
  0x44   :  { %426 = vmatprep.subr.bf16.mxu0 %v425_v21  ;;  %450 = vmatprep.subr.bf16.mxu1 %v449_v42  ;;  %v95_v55 = vld [vmem:[#allocation5 + $0xc8] sm:$0xff]  ;;  %v97_v56 = vld [vmem:[#allocation5 + $0xd8] sm:$0xff]  ;;  %v455_v57 = vpack.c.bf16 %v200_v50, %v199_v49  ;;  %v94_v59 = vld [vmem:[#allocation5 + $0xc0] sm:$0xff]  ;;  %v457_v60 = vpack.c.bf16 %v218_v54, %v217_v53 }
  0x45   :  { %v201_v61 = vld [vmem:[#allocation7 + $0x30] sm:$0xff]  ;;  %v202_v62 = vld [vmem:[#allocation7 + $0x38] sm:$0xff]  ;;  %v437_v63 = vpack.c.bf16 %v97_v56, %v95_v55  ;;  %v219_v2 = vld [vmem:[#allocation7 + $0xc0] sm:$0xff] }
  0x46   :  { %v96_v1 = vld [vmem:[#allocation5 + $0xd0] sm:$0xff]  ;;  %v220_v3 = vld [vmem:[#allocation7 + $0xc8] sm:$0xff]  ;;  %v101_v5 = vld [vmem:[#allocation5 + $0xf8] sm:$0xff]  ;;  %v459_v6 = vpack.c.bf16 %v202_v62, %v201_v61 }
  0x47   :  { %428 = vmatpush1.bf16.msra.mxu0 %v427_v30  ;;  %452 = vmatpush3.bf16.msra.mxu1 %v451_v45  ;;  %v99_v4 = vld [vmem:[#allocation5 + $0xe8] sm:$0xff]  ;;  %v439_v7 = vpack.c.bf16 %v96_v1, %v94_v59  ;;  %v98_v8 = vld [vmem:[#allocation5 + $0xe0] sm:$0xff]  ;;  %v461_v9 = vpack.c.bf16 %v220_v3, %v219_v2  ;;  %v100_v13 = vld [vmem:[#allocation5 + $0xf0] sm:$0xff] }
  0x48   :  { %430 = vmatprep.subr.bf16.mxu0 %v429_v36  ;;  %454 = vmatprep.subr.bf16.mxu1 %v453_v48  ;;  %v203_v10 = vld [vmem:[#allocation7 + $0x40] sm:$0xff]  ;;  %v204_v11 = vld [vmem:[#allocation7 + $0x48] sm:$0xff]  ;;  %v441_v12 = vpack.c.bf16 %v101_v5, %v99_v4  ;;  %v221_v14 = vld [vmem:[#allocation7 + $0xd0] sm:$0xff]  ;;  %v443_v17 = vpack.c.bf16 %v100_v13, %v98_v8  ;;  %v104_v36 = vlaneseq }
  0x49   :  { %v222_v15 = vld [vmem:[#allocation7 + $0xd8] sm:$0xff]  ;;  %v463_v16 = vpack.c.bf16 %v204_v11, %v203_v10  ;;  %v205_v19 = vld [vmem:[#allocation7 + $0x50] sm:$0xff]  ;;  %v223_v21 = vld [vmem:[#allocation7 + $0xe0] sm:$0xff] }
  0x4a   :  { %v465_v18 = vpack.c.bf16 %v222_v15, %v221_v14  ;;  %v206_v20 = vld [vmem:[#allocation7 + $0x58] sm:$0xff]  ;;  %v224_v22 = vld [vmem:[#allocation7 + $0xe8] sm:$0xff]  ;;  %v68_v24 = vld [vmem:[#allocation2] sm:$0xff]  ;;  %v105_v37 = vshrl.u32 %v104_v36, 7 }
  0x4b   :  { %432 = vmatpush1.bf16.msra.mxu0 %v431_v46  ;;  %456 = vmatpush3.bf16.msra.mxu1 %v455_v57  ;;  %v467_v23 = vpack.c.bf16 %v206_v20, %v205_v19  ;;  %v469_v25 = vpack.c.bf16 %v224_v22, %v223_v21  ;;  %v69_v26 = vld [vmem:[#allocation2 + $0x8] sm:$0xff]  ;;  %v207_v27 = vld [vmem:[#allocation7 + $0x60] sm:$0xff]  ;;  %v208_v28 = vld [vmem:[#allocation7 + $0x68] sm:$0xff] }
  0x4c   :  { %434 = vmatprep.subr.bf16.mxu0 %v433_v51  ;;  %458 = vmatprep.subr.bf16.mxu1 %v457_v60  ;;  %v471_v29 = vpack.c.bf16 %v208_v28, %v207_v27  ;;  %v225_v30 = vld [vmem:[#allocation7 + $0xf0] sm:$0xff]  ;;  %v226_v31 = vld [vmem:[#allocation7 + $0xf8] sm:$0xff]  ;;  %v106_v38 = vsub.s32 0, %v105_v37  ;;  %v110_v39 = vsub.s32 1, %v105_v37 }
  0x4d   :  { %v473_v32 = vpack.c.bf16 %v226_v31, %v225_v30  ;;  %v209_v33 = vld [vmem:[#allocation7 + $0x70] sm:$0xff]  ;;  %v210_v34 = vld [vmem:[#allocation7 + $0x78] sm:$0xff] }
  0x4e   :  { %v475_v35 = vpack.c.bf16 %v210_v34, %v209_v33  ;;  %v372_v55 = vld [vmem:[%s708_s4] ss:$0 sm:$0xff] }
  0x4f   :  { %436 = vmatpush1.bf16.msra.mxu0 %v435_v58  ;;  %460 = vmatpush3.bf16.msra.mxu1 %v459_v6  ;;  %v374_v19 = vld [vmem:[%s710_s6] ss:$0 sm:$0xff] }
  0x50   :  { %438 = vmatprep.subr.bf16.mxu0 %v437_v63  ;;  %462 = vmatprep.subr.bf16.mxu1 %v461_v9 }
  0x53   :  { %440 = vmatpush1.bf16.msra.mxu0 %v439_v7  ;;  %464 = vmatpush3.bf16.msra.mxu1 %v463_v16 }
  0x54   :  { %442 = vmatprep.subr.bf16.mxu0 %v441_v12  ;;  %466 = vmatprep.subr.bf16.mxu1 %v465_v18 }
  0x57   :  { %444 = vmatpush1.bf16.msra.mxu0 %v443_v17  ;;  %468 = vmatpush3.bf16.msra.mxu1 %v467_v23  ;;  %v373_v17 = vld [vmem:[%s709_s5] ss:$0 sm:$0xff] }
  0x58   :  { %470 = vmatprep.subr.bf16.mxu1 %v469_v25 }
  0x5a   :  { %179 = vmatmul.mubr.f32.vlgmr.msra.gmra.mrb[0].mxu0 %v68_v24 }
  0x5b   :  { %184 = vmatprep.mubr.f32.mxu0 %v591_v0  ;;  %472 = vmatpush3.bf16.msra.mxu1 %v471_v29  ;;  %v102_v0 = vld [vmem:[%s706_s2] sm:$0x3] }
  0x5c   :  { %474 = vmatprep.subr.bf16.mxu1 %v473_v32  ;;  %v107_v40 = vrot.slane %v102_v0, %v106_v38  ;;  %v111_v41 = vrot.slane %v102_v0, %v110_v39 }
  0x5e   :  { %185 = vmatmul.mubr.f32.gmra.mrb[2].mxu0 %v69_v26 }
  0x5f   :  { %476 = vmatpush3.bf16.msra.mxu1 %v475_v35 }
 0x12d   :  { %v180_v42 = vpop.f32.mrb[0].mxu0 }
 0x12e   :  { %v181_v43 = vadd.f32 %v180_v42, %v107_v40  ;;  %v182_v44 = vpop.f32.mrb[1].mxu0 }
 0x12f   :  { %v183_v45 = vadd.f32 %v182_v44, %v111_v41 }
 0x130   :  { %v191_v48 = vmax.f32 %v181_v43, 0.0 }
 0x131   :  { %v186_v46 = vpop.f32.mrb[2].mxu0  ;;  %v192_v47 = vmax.f32 %v183_v45, 0.0 }
 0x132   :  { %v187_v49 = vadd.f32 %v186_v46, %v107_v40  ;;  %v188_v50 = vpop.f32.mrb[3].mxu0 }
 0x133   :  { %v189_v51 = vadd.f32 %v188_v50, %v111_v41  ;;  %298 = vmatprep.mubr.f32.mxu1 %v192_v47 }
 0x134   :  { %299 = vmatmul.mubr.f32.vlgmr.msra.gmra.mrb[0].mxu1 %v191_v48  ;;  %v193_v53 = vmax.f32 %v187_v49, 0.0 }
 0x135   :  { %v194_v52 = vmax.f32 %v189_v51, 0.0 }
 0x137   :  { %303 = vmatprep.mubr.f32.mxu1 %v194_v52 }
 0x138   :  { %304 = vmatmul.mubr.f32.gmra.mrb[2].mxu1 %v193_v53 }
 0x207   :  { %v407_v54 = vpop.f32.mrb[0].mxu1 }
 0x208   :  { %v408_v56 = vpop.f32.mrb[1].mxu1 }
 0x209   :  { %v409_v57 = vadd.f32 %v408_v56, %v407_v54 }
 0x20b   :  { %v301_v58 = vadd.f32 %v409_v57, %v372_v55  ;;  %v410_v59 = vpop.f32.mrb[2].mxu1 }
 0x20c   :  { %v411_v60 = vpop.f32.mrb[3].mxu1 }
 0x20d   :  { %v412_v61 = vadd.f32 %v411_v60, %v410_v59  ;;  %v309_v62 = vadd.f32 %v301_v58, %v68_v24 }
 0x20f   :  { %v306_v63 = vadd.f32 %v412_v61, %v372_v55  ;;  %311 = vadd.xlane.f32.xlu0 %v309_v62 }
 0x211   :  { %v310_v1 = vadd.f32 %v306_v63, %v69_v26 }
 0x213   :  { %313 = vadd.xlane.f32.xlu0 %v310_v1 }
 0x29c   :  { %v312_v2 = vpop.xlane.xlu0 %311 }
 0x29d   :  { %v316_v3 = vmul.f32 0.0078125, %v312_v2 }
 0x29f   :  { %v318_v4 = vsub.f32 %v309_v62, %v316_v3 }
 0x2a0   :  { %v314_v5 = vpop.xlane.xlu0 %313 }
 0x2a1   :  { %v317_v6 = vmul.f32 0.0078125, %v314_v5  ;;  %v320_v7 = vmul.f32 %v318_v4, %v318_v4 }
 0x2a3   :  { %v319_v8 = vsub.f32 %v310_v1, %v317_v6  ;;  %322 = vadd.xlane.f32.xlu1 %v320_v7 }
 0x2a5   :  { %v321_v9 = vmul.f32 %v319_v8, %v319_v8 }
 0x2a7   :  { %324 = vadd.xlane.f32.xlu1 %v321_v9 }
 0x330   :  { %v323_v10 = vpop.xlane.xlu1 %322 }
 0x331   :  { %v326_v11 = vmul.f32 0.0078125, %v323_v10 }
 0x333   :  { %v328_v12 = vadd.f32 1e-06, %v326_v11 }
 0x334   :  { %v325_v13 = vpop.xlane.xlu1 %324 }
 0x335   :  { %486 = vrsqrt.f32 %v328_v12  ;;  %v327_v14 = vmul.f32 0.0078125, %v325_v13 }
 0x337   :  { %v329_v15 = vadd.f32 1e-06, %v327_v14 }
 0x339   :  { %488 = vrsqrt.f32 %v329_v15 }
 0x33f   :  { %v487_v16 = vpop.eup %486 }
 0x340   :  { %v332_v18 = vmul.f32 %v487_v16, %v318_v4 }
 0x342   :  { %v341_v20 = vmul.f32 %v373_v17, %v332_v18 }
 0x343   :  { %v489_v21 = vpop.eup %488 }
 0x344   :  { %v333_v22 = vmul.f32 %v489_v21, %v319_v8  ;;  %v350_v23 = vadd.f32 %v374_v19, %v341_v20 }
 0x346   :  { %v342_v24 = vmul.f32 %v373_v17, %v333_v22  ;;  %352 = vst [vmem:[#allocation8] sm:$0xff] %v350_v23 }
 0x348   :  { %v351_v25 = vadd.f32 %v374_v19, %v342_v24 }
 0x34a   :  { %353 = vst [vmem:[#allocation8 + $0x8] sm:$0xff] %v351_v25 }
 0x34b   :  { %567 = shalt.err (!%p564_p0)
}
 0x34c   :  { %s568_s24 = scalar_lea.hbm %s711_s7, 256 }
 0x34d   :  { %p569_p1 = scmp.ne.s32.totalorder %s711_s7, %s568_s24  ;;  %p572_p2 = scmp.lt.u32.totalorder %s568_s24, %s711_s7 }
 0x34f   :  { %p574_p3 = pnand %p572_p2, %p569_p1 }
 0x351   :  { %577 = shalt.err (!%p574_p3)
}
 0x352   :  { %365 = dma.vmem_to_hbm [thread:$0]  %s360_s22, 256, %s711_s7, [#allocation4], %s588_s1, %s588_s1, %s589_s25  }
 0x353   :  { %582 = dma.done.wait [#allocation4], 256  }
 0x354   :  { %583 = vsyncadd [#allocation4], 4294967040 }
 0x355   :  { %369 = vsyncpa [#allocation3], 1 }
 0x356   :  { %370 = vsyncpa [#allocation6], 1 }
 0x357   :  { %371 = vsyncpa [#allocation4], 1 }

</bundles_post_ra>
